<compile_context>
chip_gen: v5e
topology: v5e:2x2
jax: 0.10.0
libtpu: 0.0.40
codegen_flags: <defaults>
</compile_context>

<pallas_src>
import jax
import jax.numpy as jnp
from jax.experimental import pallas as pl
from jax.experimental.pallas import tpu as pltpu

D_IN, HIDDEN, D_OUT = 2, 1000, 2
PAD_IN, PAD_HID, PAD_OUT = 8, 1024, 8
TB_MAX = 512  # batch-tile rows (bounds VMEM; amortizes ~0.35 us/step overhead)


def odefunc_kernel(y_ref, w1_ref, w2_ref, o_ref):
    # cube (VPU, f32) -> matmul K=8 (MXU, f32) -> tanh (EUP, f32)
    # -> matmul K=1024 (MXU, bf16 in / f32 acc)
    y = y_ref[...]                                  # (TB, 8) f32, padded lanes 0
    y3 = y * y * y
    h = jnp.tanh(
        jnp.dot(y3, w1_ref[...], preferred_element_type=jnp.float32)
    )                                               # (TB, 1024) f32
    o_ref[...] = jnp.dot(
        h.astype(jnp.bfloat16), w2_ref[...],
        preferred_element_type=jnp.float32,
    ).astype(o_ref.dtype)                           # (TB, 8) f32


def prepare_weights(W1, W2):
    """Pad weights once per solve (hoisted out of the per-evaluation path).

    W1 -> (8, 1024) f32 slab (K padded 2->8, N padded 1000->1024).
    W2 -> (1024, 8) bf16 slab (K padded 1000->1024, N padded 2->8).
    """
    w1_pad = jnp.zeros((PAD_IN, PAD_HID), jnp.float32).at[:D_IN, :HIDDEN].set(
        W1.astype(jnp.float32))
    w2_pad = jnp.zeros((PAD_HID, PAD_OUT), jnp.bfloat16).at[:HIDDEN, :D_OUT].set(
        W2.astype(jnp.bfloat16))
    return w1_pad, w2_pad


def ode_func_sampler(t, y, w1_pad, w2_pad):
    """Forward pass of ODEFuncSampler: out = tanh((y**3) @ W1) @ W2.

    `t` is accepted for API parity with the PyTorch module but unused
    (exactly as in the reference forward). `w1_pad`/`w2_pad` come from
    prepare_weights() so no weight re-padding happens per evaluation.
    """
    del t
    B = y.shape[0]
    B8 = max(8, ((B + 7) // 8) * 8)
    TB = min(TB_MAX, B8)
    B_pad = ((B8 + TB - 1) // TB) * TB
    grid = (B_pad // TB,)

    y_flat = y.reshape(B, D_IN).astype(jnp.float32)
    y_pad = jnp.zeros((B_pad, PAD_IN), jnp.float32).at[:B, :D_IN].set(y_flat)

    cost = pl.CostEstimate(
        flops=2 * B * D_IN * HIDDEN + 2 * B * HIDDEN * D_OUT,
        transcendentals=B * HIDDEN,
        bytes_accessed=(B_pad * PAD_IN * 4          # y slab
                        + PAD_IN * PAD_HID * 4      # W1 slab (f32)
                        + PAD_HID * PAD_OUT * 2     # W2 slab (bf16)
                        + B_pad * PAD_OUT * 4),     # out slab
    )

    out_pad = pl.pallas_call(
        odefunc_kernel,
        out_shape=jax.ShapeDtypeStruct((B_pad, PAD_OUT), jnp.float32),
        grid=grid,
        in_specs=[
            pl.BlockSpec((TB, PAD_IN), lambda i: (i, 0)),
            pl.BlockSpec((PAD_IN, PAD_HID), lambda i: (0, 0)),   # resident
            pl.BlockSpec((PAD_HID, PAD_OUT), lambda i: (0, 0)),  # resident
        ],
        out_specs=pl.BlockSpec((TB, PAD_OUT), lambda i: (i, 0)),
        compiler_params=pltpu.CompilerParams(
            dimension_semantics=("parallel",)),
        cost_estimate=cost,
    )(y_pad, w1_pad, w2_pad)

    # Back to the PyTorch output shape (B, 1, D_OUT)
    return out_pad[:B, :D_OUT].reshape(B, 1, D_OUT)


if __name__ == "__main__":
    key = jax.random.PRNGKey(0)
    k_y, k_w1, k_w2 = jax.random.split(key, 3)

    B = 8
    # y matches the usual neural-ODE state shape (batch, 1, 2)
    y = jax.random.normal(k_y, (B, 1, D_IN), dtype=jnp.float32)
    t = jnp.float32(0.0)

    # Deterministic synthetic weights (shapes from WeightSampler(2,1000) /
    # WeightSampler(1000,2): W = nn.Linear(out, in).weight -> (in, out)).
    W1 = 0.1 * jax.random.normal(k_w1, (D_IN, HIDDEN), dtype=jnp.float32)
    W2 = 0.1 * jax.random.normal(k_w2, (HIDDEN, D_OUT), dtype=jnp.float32)

    # Pad weights once (per solve), not per evaluation.
    w1_pad, w2_pad = prepare_weights(W1, W2)

    out = ode_func_sampler(t, y, w1_pad, w2_pad)
    out = jax.block_until_ready(out)
    assert out.shape == (B, 1, D_OUT)

    # Matched-precision reference (bf16 inputs / f32 accumulate on the second
    # matmul, like the kernel) -> tight tolerance.
    y_flat = y.reshape(B, D_IN).astype(jnp.float32)
    y3 = y_flat ** 3
    h = jnp.tanh(jnp.dot(y3, W1, preferred_element_type=jnp.float32))
    ref = jnp.dot(h.astype(jnp.bfloat16), W2.astype(jnp.bfloat16),
                  preferred_element_type=jnp.float32).reshape(B, 1, D_OUT)
    assert jnp.allclose(out, ref, atol=1e-4, rtol=1e-4)

    # Loose sanity check against the exact f32 math of the PyTorch module
    # (bf16 W2 introduces ~1e-3-level relative error behind the tanh).
    ref_f32 = (jnp.tanh(y3 @ W1) @ W2).reshape(B, 1, D_OUT)
    assert jnp.allclose(out, ref_f32, atol=5e-2, rtol=5e-2)

    print("KERNEL_OK")
</pallas_src>

<mosaic_0001>
module attributes {stable_mosaic.version = 11 : i64} {
  func.func @odefunc_kernel(%arg0: i32, %arg1: memref<8x8xf32, #tpu.memory_space<vmem>>, %arg2: memref<8x1024xf32, #tpu.memory_space<vmem>>, %arg3: memref<1024x8xbf16, #tpu.memory_space<vmem>>, %arg4: memref<8x8xf32, #tpu.memory_space<vmem>>) attributes {dimension_semantics = [#tpu.dimension_semantics<parallel>], iteration_bounds = array<i64: 1>, scalar_prefetch = 0 : i64, scratch_operands = 0 : i64, tpu.core_type = #tpu.core_type<tc>, window_params = [{transform_indices = @transform_0, window_bounds = array<i64: 8, 8>}, {pipeline_mode = #tpu.pipeline_mode<synchronous>, transform_indices = @transform_1, window_bounds = array<i64: 8, 1024>}, {pipeline_mode = #tpu.pipeline_mode<synchronous>, transform_indices = @transform_2, window_bounds = array<i64: 1024, 8>}, {transform_indices = @transform_3, window_bounds = array<i64: 8, 8>}]} {
    %c0 = arith.constant 0 : index
    %c0_0 = arith.constant 0 : index
    %0 = vector.load %arg1[%c0, %c0_0] : memref<8x8xf32, #tpu.memory_space<vmem>>, vector<8x8xf32>
    %1 = arith.mulf %0, %0 : vector<8x8xf32>
    %2 = arith.mulf %1, %0 : vector<8x8xf32>
    %c0_1 = arith.constant 0 : index
    %c0_2 = arith.constant 0 : index
    %3 = vector.load %arg2[%c0_1, %c0_2] : memref<8x1024xf32, #tpu.memory_space<vmem>>, vector<8x1024xf32>
    %cst = arith.constant dense<0.000000e+00> : vector<8x1024xf32>
    %4 = tpu.matmul %2, %3, %cst {dimension_numbers = #tpu.dot_dimension_numbers<[1], [0], [0], [1], [0, 0, 1, 1], [], []>} : vector<8x8xf32>, vector<8x1024xf32>, vector<8x1024xf32> -> vector<8x1024xf32>
    %5 = math.tanh %4 : vector<8x1024xf32>
    %6 = arith.truncf %5 : vector<8x1024xf32> to vector<8x1024xbf16>
    %c0_3 = arith.constant 0 : index
    %c0_4 = arith.constant 0 : index
    %7 = vector.load %arg3[%c0_3, %c0_4] : memref<1024x8xbf16, #tpu.memory_space<vmem>>, vector<1024x8xbf16>
    %cst_5 = arith.constant dense<0.000000e+00> : vector<8x8xf32>
    %8 = tpu.matmul %6, %7, %cst_5 {dimension_numbers = #tpu.dot_dimension_numbers<[1], [0], [0], [1], [0, 0, 1, 1], [], []>} : vector<8x1024xbf16>, vector<1024x8xbf16>, vector<8x8xf32> -> vector<8x8xf32>
    %c0_6 = arith.constant 0 : index
    %c0_7 = arith.constant 0 : index
    %9 = vector.load %arg4[%c0_6, %c0_7] : memref<8x8xf32, #tpu.memory_space<vmem>>, vector<8x8xf32>
    tpu.vector_store %arg4[%c0_6, %c0_7], %8 {strides = array<i32>} : memref<8x8xf32, #tpu.memory_space<vmem>>, vector<8x8xf32>,
    return
  }
  func.func @transform_0(%arg0: i32) -> (i32, i32) {
    %c0_i32 = arith.constant 0 : i32
    %c0_i32_0 = arith.constant 0 : i32
    return %arg0, %c0_i32 : i32, i32
  }
  func.func @transform_1(%arg0: i32) -> (i32, i32) {
    %c0_i32 = arith.constant 0 : i32
    %c0_i32_0 = arith.constant 0 : i32
    %c0_i32_1 = arith.constant 0 : i32
    return %c0_i32, %c0_i32_0 : i32, i32
  }
  func.func @transform_2(%arg0: i32) -> (i32, i32) {
    %c0_i32 = arith.constant 0 : i32
    %c0_i32_0 = arith.constant 0 : i32
    %c0_i32_1 = arith.constant 0 : i32
    return %c0_i32, %c0_i32_0 : i32, i32
  }
  func.func @transform_3(%arg0: i32) -> (i32, i32) {
    %c0_i32 = arith.constant 0 : i32
    %c0_i32_0 = arith.constant 0 : i32
    return %arg0, %c0_i32 : i32, i32
  }
}

</mosaic_0001>

<bundles_post_ra>
// kernel: tpu_custom_call.1
= control target key start
LH: loop header
LB: loop body
LE: loop exit
PB: predicated region body
PF: predicated region fallthrough
CT: control target
= control target key end

     0   :  { %vm26_vm0 = vcmask 64512   ;;  %s1462_s0 = inlined_call_operand.vmem [shape: f32[8,8], index: 0, kind: input, shape index: {}]   ;;  %s1463_s1 = inlined_call_operand.vmem [shape: f32[8,1024], index: 1, kind: input, shape index: {}]   ;;  %s1464_s2 = inlined_call_operand.vmem [shape: bf16[1024,8], index: 2, kind: input, shape index: {}]   ;;  %s1465_s3 = inlined_call_operand.hbm [shape: f32[8,8], index: 3, kind: output, shape index: {}]  }
   0x1   :  { %v18_v0 = vld [vmem:[%s1463_s1] sm:$0xff]  ;;  %v20_v1 = vld [vmem:[%s1463_s1 + $0x10] sm:$0xff]  ;;  %v21_v2 = vld [vmem:[%s1463_s1 + $0x18] sm:$0xff] }
   0x2   :  { %45 = vmatpush.msra.mxu0 %v18_v0  ;;  %85 = vmatpush.msra.mxu2 %v20_v1  ;;  %v15_v3 = vld [vmem:[%s1462_s0] sm:$0xff]  ;;  %v19_v4 = vld [vmem:[%s1463_s1 + $0x8] sm:$0xff]  ;;  %v24_v5 = vld [vmem:[%s1463_s1 + $0x30] sm:$0xff] }
   0x3   :  { %105 = vmatpush.msra.mxu3 %v21_v2  ;;  %v16_v6 = vmul.f32 %v15_v3, %v15_v3  ;;  %65 = vmatpush.msra.mxu1 %v19_v4  ;;  %v25_v7 = vld [vmem:[%s1463_s1 + $0x38] sm:$0xff]  ;;  %v22_v8 = vld [vmem:[%s1463_s1 + $0x20] sm:$0xff]  ;;  %v23_v9 = vld [vmem:[%s1463_s1 + $0x28] sm:$0xff] }
   0x4   :  { %165 = vmatpush.msrb.mxu2 %v24_v5  ;;  %125 = vmatpush.msrb.mxu0 %v22_v8  ;;  %v1110_v11 = vld [vmem:[%s1464_s2 + $0x38] sm:$0xff]  ;;  %v1109_v15 = vld [vmem:[%s1464_s2 + $0x30] sm:$0xff]  ;;  %v1108_v19 = vld [vmem:[%s1464_s2 + $0x28] sm:$0xff] }
   0x5   :  { %185 = vmatpush.msrb.mxu3 %v25_v7  ;;  %v17_v10 = vmul.f32 %v16_v6, %v15_v3  ;;  %145 = vmatpush.msrb.mxu1 %v23_v9  ;;  %v1118_v12 = vld [vmem:[%s1464_s2 + $0x78] sm:$0xff]  ;;  %v1117_v16 = vld [vmem:[%s1464_s2 + $0x70] sm:$0xff]  ;;  %v1116_v20 = vld [vmem:[%s1464_s2 + $0x68] sm:$0xff] }
   0x6   :  { %v1126_v13 = vld [vmem:[%s1464_s2 + $0xb8] sm:$0xff]  ;;  %v1125_v17 = vld [vmem:[%s1464_s2 + $0xb0] sm:$0xff]  ;;  %v1124_v21 = vld [vmem:[%s1464_s2 + $0xa8] sm:$0xff] }
   0x7   :  { %v1134_v14 = vld [vmem:[%s1464_s2 + $0xf8] sm:$0xff]  ;;  %839 = vmatmul.msk.f32.vlgmr.msra.gmra.mxu0 %vm26_vm0, %v17_v10  ;;  %841 = vmatmul.msk.f32.vlgmr.msra.gmra.mxu2 %vm26_vm0, %v17_v10  ;;  %v1133_v18 = vld [vmem:[%s1464_s2 + $0xf0] sm:$0xff]  ;;  %v1132_v22 = vld [vmem:[%s1464_s2 + $0xe8] sm:$0xff] }
   0x8   :  { %842 = vmatmul.msk.f32.vlgmr.msra.gmra.mxu3 %vm26_vm0, %v17_v10  ;;  %840 = vmatmul.msk.f32.vlgmr.msra.gmra.mxu1 %vm26_vm0, %v17_v10 }
   0x9   :  { %718 = vmatpush.bf16.msra.mxu0 %v1110_v11  ;;  %731 = vmatpush.bf16.msra.mxu1 %v1118_v12 }
   0xa   :  { %744 = vmatpush.bf16.msra.mxu2 %v1126_v13  ;;  %757 = vmatpush.bf16.msra.mxu3 %v1134_v14 }
   0xd   :  { %719 = vmatpush.bf16.msra.mxu0 %v1109_v15  ;;  %732 = vmatpush.bf16.msra.mxu1 %v1117_v16 }
   0xe   :  { %745 = vmatpush.bf16.msra.mxu2 %v1125_v17  ;;  %758 = vmatpush.bf16.msra.mxu3 %v1133_v18 }
   0xf   :  { %843 = vmatmul.msk.f32.vlgmr.msrb.gmra.mxu0 %vm26_vm0, %v17_v10  ;;  %845 = vmatmul.msk.f32.vlgmr.msrb.gmra.mxu2 %vm26_vm0, %v17_v10 }
  0x10   :  { %8 = vsyncpa [#allocation3], 0  ;;  %846 = vmatmul.msk.f32.vlgmr.msrb.gmra.mxu3 %vm26_vm0, %v17_v10  ;;  %844 = vmatmul.msk.f32.vlgmr.msrb.gmra.mxu1 %vm26_vm0, %v17_v10  ;;  %v1107_v23 = vld [vmem:[%s1464_s2 + $0x20] sm:$0xff]  ;;  %v1106_v27 = vld [vmem:[%s1464_s2 + $0x18] sm:$0xff]  ;;  %s830_s16 = sshll.u32 %s1465_s3, 4  ;;  %s831_s16 = int_to_ptr.hbm [resolvable:$true] %s830_s16 }
  0x11   :  { %720 = vmatpush.bf16.msra.mxu0 %v1108_v19  ;;  %733 = vmatpush.bf16.msra.mxu1 %v1116_v20  ;;  %v1115_v24 = vld [vmem:[%s1464_s2 + $0x60] sm:$0xff]  ;;  %v1114_v28 = vld [vmem:[%s1464_s2 + $0x58] sm:$0xff]  ;;  %v1105_v31 = vld [vmem:[%s1464_s2 + $0x10] sm:$0xff] }
  0x12   :  { %746 = vmatpush.bf16.msra.mxu2 %v1124_v21  ;;  %759 = vmatpush.bf16.msra.mxu3 %v1132_v22  ;;  %v1123_v25 = vld [vmem:[%s1464_s2 + $0xa0] sm:$0xff]  ;;  %v1122_v29 = vld [vmem:[%s1464_s2 + $0x98] sm:$0xff]  ;;  %v1113_v32 = vld [vmem:[%s1464_s2 + $0x50] sm:$0xff] }
  0x13   :  { %v1131_v26 = vld [vmem:[%s1464_s2 + $0xe0] sm:$0xff]  ;;  %v1130_v30 = vld [vmem:[%s1464_s2 + $0xd8] sm:$0xff]  ;;  %v1121_v33 = vld [vmem:[%s1464_s2 + $0x90] sm:$0xff] }
  0x14   :  { %v1129_v34 = vld [vmem:[%s1464_s2 + $0xd0] sm:$0xff]  ;;  %v1104_v35 = vld [vmem:[%s1464_s2 + $0x8] sm:$0xff]  ;;  %v1103_v39 = vld [vmem:[%s1464_s2] sm:$0xff] }
  0x15   :  { %721 = vmatpush.bf16.msra.mxu0 %v1107_v23  ;;  %734 = vmatpush.bf16.msra.mxu1 %v1115_v24  ;;  %v1112_v36 = vld [vmem:[%s1464_s2 + $0x48] sm:$0xff]  ;;  %v1111_v40 = vld [vmem:[%s1464_s2 + $0x40] sm:$0xff]  ;;  %v1142_v41 = vld [vmem:[%s1464_s2 + $0x138] sm:$0xff] }
  0x16   :  { %747 = vmatpush.bf16.msra.mxu2 %v1123_v25  ;;  %760 = vmatpush.bf16.msra.mxu3 %v1131_v26  ;;  %v1120_v37 = vld [vmem:[%s1464_s2 + $0x88] sm:$0xff]  ;;  %v1150_v42 = vld [vmem:[%s1464_s2 + $0x178] sm:$0xff]  ;;  %v1141_v43 = vld [vmem:[%s1464_s2 + $0x130] sm:$0xff] }
  0x17   :  { %v1128_v38 = vld [vmem:[%s1464_s2 + $0xc8] sm:$0xff]  ;;  %v1119_v44 = vld [vmem:[%s1464_s2 + $0x80] sm:$0xff]  ;;  %v1149_v46 = vld [vmem:[%s1464_s2 + $0x170] sm:$0xff] }
  0x18   :  { %v1127_v45 = vld [vmem:[%s1464_s2 + $0xc0] sm:$0xff]  ;;  %v1158_v47 = vld [vmem:[%s1464_s2 + $0x1b8] sm:$0xff]  ;;  %v1140_v49 = vld [vmem:[%s1464_s2 + $0x128] sm:$0xff] }
  0x19   :  { %722 = vmatpush.bf16.msra.mxu0 %v1106_v27  ;;  %735 = vmatpush.bf16.msra.mxu1 %v1114_v28  ;;  %v1166_v48 = vld [vmem:[%s1464_s2 + $0x1f8] sm:$0xff]  ;;  %v1148_v50 = vld [vmem:[%s1464_s2 + $0x168] sm:$0xff]  ;;  %v1157_v51 = vld [vmem:[%s1464_s2 + $0x1b0] sm:$0xff] }
  0x1a   :  { %748 = vmatpush.bf16.msra.mxu2 %v1122_v29  ;;  %761 = vmatpush.bf16.msra.mxu3 %v1130_v30  ;;  %v1165_v52 = vld [vmem:[%s1464_s2 + $0x1f0] sm:$0xff]  ;;  %v1139_v53 = vld [vmem:[%s1464_s2 + $0x120] sm:$0xff]  ;;  %v1156_v55 = vld [vmem:[%s1464_s2 + $0x1a8] sm:$0xff] }
  0x1b   :  { %v1147_v54 = vld [vmem:[%s1464_s2 + $0x160] sm:$0xff]  ;;  %v1164_v56 = vld [vmem:[%s1464_s2 + $0x1e8] sm:$0xff]  ;;  %v1138_v57 = vld [vmem:[%s1464_s2 + $0x118] sm:$0xff] }
  0x1c   :  { %v1146_v58 = vld [vmem:[%s1464_s2 + $0x158] sm:$0xff]  ;;  %v1155_v59 = vld [vmem:[%s1464_s2 + $0x1a0] sm:$0xff]  ;;  %v1137_v61 = vld [vmem:[%s1464_s2 + $0x110] sm:$0xff] }
  0x1d   :  { %723 = vmatpush.bf16.msra.mxu0 %v1105_v31  ;;  %736 = vmatpush.bf16.msra.mxu1 %v1113_v32  ;;  %v1163_v60 = vld [vmem:[%s1464_s2 + $0x1e0] sm:$0xff]  ;;  %v1145_v62 = vld [vmem:[%s1464_s2 + $0x150] sm:$0xff]  ;;  %v1154_v63 = vld [vmem:[%s1464_s2 + $0x198] sm:$0xff] }
  0x1e   :  { %749 = vmatpush.bf16.msra.mxu2 %v1121_v33  ;;  %762 = vmatpush.bf16.msra.mxu3 %v1129_v34  ;;  %v1162_v0 = vld [vmem:[%s1464_s2 + $0x1d8] sm:$0xff]  ;;  %v1136_v1 = vld [vmem:[%s1464_s2 + $0x108] sm:$0xff]  ;;  %v1153_v3 = vld [vmem:[%s1464_s2 + $0x190] sm:$0xff] }
  0x1f   :  { %v1144_v2 = vld [vmem:[%s1464_s2 + $0x148] sm:$0xff]  ;;  %v1161_v4 = vld [vmem:[%s1464_s2 + $0x1d0] sm:$0xff]  ;;  %v1135_v5 = vld [vmem:[%s1464_s2 + $0x100] sm:$0xff] }
  0x20   :  { %v1143_v6 = vld [vmem:[%s1464_s2 + $0x140] sm:$0xff]  ;;  %v1152_v7 = vld [vmem:[%s1464_s2 + $0x188] sm:$0xff] }
  0x21   :  { %724 = vmatpush.bf16.msra.mxu0 %v1104_v35  ;;  %737 = vmatpush.bf16.msra.mxu1 %v1112_v36  ;;  %v1160_v8 = vld [vmem:[%s1464_s2 + $0x1c8] sm:$0xff]  ;;  %v1151_v9 = vld [vmem:[%s1464_s2 + $0x180] sm:$0xff] }
  0x22   :  { %750 = vmatpush.bf16.msra.mxu2 %v1120_v37  ;;  %763 = vmatpush.bf16.msra.mxu3 %v1128_v38  ;;  %v1159_v10 = vld [vmem:[%s1464_s2 + $0x1c0] sm:$0xff]  ;;  %s1210_s2 = smov [#allocation2]  }
  0x23   :  { %s828_s13 = sshll.u32 %s1210_s2, 4  ;;  %s829_s13 = int_to_ptr.vmem [resolvable:$true] %s828_s13 }
  0x25   :  { %725 = vmatpush.bf16.msra.mxu0 %v1103_v39  ;;  %738 = vmatpush.bf16.msra.mxu1 %v1111_v40 }
  0x26   :  { %751 = vmatpush.bf16.msra.mxu2 %v1119_v44  ;;  %764 = vmatpush.bf16.msra.mxu3 %v1127_v45 }
  0x29   :  { %770 = vmatpush.bf16.msrb.mxu0 %v1142_v41  ;;  %783 = vmatpush.bf16.msrb.mxu1 %v1150_v42 }
  0x2a   :  { %796 = vmatpush.bf16.msrb.mxu2 %v1158_v47  ;;  %809 = vmatpush.bf16.msrb.mxu3 %v1166_v48 }
  0x2d   :  { %771 = vmatpush.bf16.msrb.mxu0 %v1141_v43  ;;  %784 = vmatpush.bf16.msrb.mxu1 %v1149_v46 }
  0x2e   :  { %797 = vmatpush.bf16.msrb.mxu2 %v1157_v51  ;;  %810 = vmatpush.bf16.msrb.mxu3 %v1165_v52 }
  0x31   :  { %772 = vmatpush.bf16.msrb.mxu0 %v1140_v49  ;;  %785 = vmatpush.bf16.msrb.mxu1 %v1148_v50 }
  0x32   :  { %798 = vmatpush.bf16.msrb.mxu2 %v1156_v55  ;;  %811 = vmatpush.bf16.msrb.mxu3 %v1164_v56 }
  0x35   :  { %773 = vmatpush.bf16.msrb.mxu0 %v1139_v53  ;;  %786 = vmatpush.bf16.msrb.mxu1 %v1147_v54 }
  0x36   :  { %799 = vmatpush.bf16.msrb.mxu2 %v1155_v59  ;;  %812 = vmatpush.bf16.msrb.mxu3 %v1163_v60 }
  0x39   :  { %774 = vmatpush.bf16.msrb.mxu0 %v1138_v57  ;;  %787 = vmatpush.bf16.msrb.mxu1 %v1146_v58 }
  0x3a   :  { %800 = vmatpush.bf16.msrb.mxu2 %v1154_v63  ;;  %813 = vmatpush.bf16.msrb.mxu3 %v1162_v0 }
  0x3d   :  { %775 = vmatpush.bf16.msrb.mxu0 %v1137_v61  ;;  %788 = vmatpush.bf16.msrb.mxu1 %v1145_v62 }
  0x3e   :  { %801 = vmatpush.bf16.msrb.mxu2 %v1153_v3  ;;  %814 = vmatpush.bf16.msrb.mxu3 %v1161_v4 }
  0x41   :  { %776 = vmatpush.bf16.msrb.mxu0 %v1136_v1  ;;  %789 = vmatpush.bf16.msrb.mxu1 %v1144_v2 }
  0x42   :  { %802 = vmatpush.bf16.msrb.mxu2 %v1152_v7  ;;  %815 = vmatpush.bf16.msrb.mxu3 %v1160_v8 }
  0x45   :  { %777 = vmatpush.bf16.msrb.mxu0 %v1135_v5  ;;  %790 = vmatpush.bf16.msrb.mxu1 %v1143_v6 }
  0x46   :  { %803 = vmatpush.bf16.msrb.mxu2 %v1151_v9  ;;  %816 = vmatpush.bf16.msrb.mxu3 %v1159_v10 }
  0x84   :  { %v47_v11 = vpop.f32.mrf.mxu0 }
  0x85   :  { %1168 = vtanh.f32 %v47_v11  ;;  %v67_v12 = vpop.f32.mrf.mxu1 }
  0x86   :  { %1170 = vtanh.f32 %v67_v12 }
  0x8a   :  { %v87_v13 = vpop.f32.mrf.mxu2 }
  0x8b   :  { %v1169_v14 = vpop.eup %1168  ;;  %1172 = vtanh.f32 %v87_v13  ;;  %v107_v15 = vpop.f32.mrf.mxu3 }
  0x8c   :  { %v1171_v16 = vpop.eup %1170  ;;  %v198_v17 = vpack.c.bf16 %v1169_v14, %v1169_v14  ;;  %1174 = vtanh.f32 %v107_v15  ;;  %v127_v19 = vpop.f32.mrf.mxu0 }
  0x8d   :  { %v199_v18 = vpack.c.bf16 %v1171_v16, %v1171_v16  ;;  %v147_v20 = vpop.f32.mrf.mxu1  ;;  %1176 = vtanh.f32 %v127_v19 }
  0x8e   :  { %726 = vmatmul.bf16.vlgmr.msra.gmra.mxu0 %v198_v17  ;;  %1178 = vtanh.f32 %v147_v20 }
  0x8f   :  { %739 = vmatmul.bf16.vlgmr.msra.gmra.mxu1 %v199_v18 }
  0x91   :  { %v1173_v21 = vpop.eup %1172 }
  0x92   :  { %v1175_v22 = vpop.eup %1174  ;;  %v200_v23 = vpack.c.bf16 %v1173_v21, %v1173_v21  ;;  %v167_v25 = vpop.f32.mrf.mxu2 }
  0x93   :  { %v201_v24 = vpack.c.bf16 %v1175_v22, %v1175_v22  ;;  %v187_v26 = vpop.f32.mrf.mxu3  ;;  %v1177_v27 = vpop.eup %1176  ;;  %1180 = vtanh.f32 %v167_v25 }
  0x94   :  { %752 = vmatmul.bf16.vlgmr.msra.gmra.mxu2 %v200_v23  ;;  %v1179_v28 = vpop.eup %1178  ;;  %1182 = vtanh.f32 %v187_v26  ;;  %v202_v29 = vpack.c.bf16 %v1177_v27, %v1177_v27 }
  0x95   :  { %765 = vmatmul.bf16.vlgmr.msra.gmra.mxu3 %v201_v24  ;;  %v203_v30 = vpack.c.bf16 %v1179_v28, %v1179_v28 }
  0x99   :  { %v1181_v31 = vpop.eup %1180 }
  0x9a   :  { %v1183_v32 = vpop.eup %1182  ;;  %v204_v33 = vpack.c.bf16 %v1181_v31, %v1181_v31 }
  0x9b   :  { %v205_v34 = vpack.c.bf16 %v1183_v32, %v1183_v32 }
  0x9e   :  { %778 = vmatmul.bf16.vlgmr.msrb.gmra.mxu0 %v202_v29 }
  0x9f   :  { %791 = vmatmul.bf16.vlgmr.msrb.gmra.mxu1 %v203_v30 }
  0xa4   :  { %804 = vmatmul.bf16.vlgmr.msrb.gmra.mxu2 %v204_v33 }
  0xa5   :  { %817 = vmatmul.bf16.vlgmr.msrb.gmra.mxu3 %v205_v34 }
 0x10b   :  { %v727_v35 = vpop.f32.mrf.mxu0 }
 0x10c   :  { %v740_v36 = vpop.f32.mrf.mxu1 }
 0x10d   :  { %v741_v39 = vadd.f32 %v740_v36, %v727_v35 }
 0x113   :  { %v729_v37 = vpop.f32.mrf.mxu0 }
 0x114   :  { %v742_v38 = vpop.f32.mrf.mxu1 }
 0x117   :  { %v753_v40 = vpop.f32.mrf.mxu2 }
 0x118   :  { %v766_v41 = vpop.f32.mrf.mxu3  ;;  %v754_v42 = vadd.f32 %v753_v40, %v741_v39 }
 0x11a   :  { %v767_v45 = vadd.f32 %v766_v41, %v754_v42 }
 0x11b   :  { %v779_v43 = vpop.f32.mrf.mxu0 }
 0x11c   :  { %v792_v44 = vpop.f32.mrf.mxu1  ;;  %v780_v48 = vadd.f32 %v779_v43, %v767_v45 }
 0x11e   :  { %v793_v51 = vadd.f32 %v792_v44, %v780_v48 }
 0x11f   :  { %v755_v46 = vpop.f32.mrf.mxu2 }
 0x120   :  { %v768_v47 = vpop.f32.mrf.mxu3 }
 0x123   :  { %v781_v49 = vpop.f32.mrf.mxu0 }
 0x124   :  { %v794_v50 = vpop.f32.mrf.mxu1 }
 0x127   :  { %v805_v52 = vpop.f32.mrf.mxu2 }
 0x128   :  { %v806_v53 = vadd.f32 %v805_v52, %v793_v51  ;;  %v818_v54 = vpop.f32.mrf.mxu3 }
 0x12a   :  { %v819_v55 = vadd.f32 %v818_v54, %v806_v53 }
 0x12c   :  { %822 = vst.msk [vmem:[#allocation2] sm:$0xff] %vm26_vm0, %v819_v55 }
 0x12d   :  { %833 = dma.vmem_to_hbm [thread:$0]  %s829_s13, 128, %s831_s16, [#allocation3]  }
 0x12f   :  { %v807_v56 = vpop.f32.mrf.mxu2 }
 0x130   :  { %v820_v57 = vpop.f32.mrf.mxu3 }
 0x131   :  { %1208 = dma.done.wait [#allocation3], 128  }
 0x132   :  { %1209 = vsyncadd [#allocation3], 4294967168 }
 0x133   :  { %838 = vsyncpa [#allocation3], 1 }

</bundles_post_ra>
